<compile_context>
chip_gen: v7x
topology: tpu7x:2x2x1
jax: 0.10.0
libtpu: 0.0.40
codegen_flags: <defaults>
</compile_context>

<pallas_src>
import jax
import jax.numpy as jnp
from jax.experimental import pallas as pl
from jax.experimental.pallas import tpu as pltpu

N_TRACK = 10
N_WAYPOINTS = 3
HIDDEN = 128
FLAT = N_TRACK * 2          # 20 features per track side
IN_DIM = 2 * FLAT           # 40
OUT_DIM = N_WAYPOINTS * 2   # 6

_MXU_TILE = 256             # batch-tile granularity for large B (MXU M alignment)
_MAX_TB = 2048              # per-step tile cap (VMEM-friendly on v5e/v6e/v7x)
_SMALL_BATCH = 256          # below this, size the tile to the batch itself


def _round_up(n, m):
    return ((n + m - 1) // m) * m


def _mlp_kernel(tl_ref, tr_ref,
                w1a_ref, w1b_ref, b1_ref,
                w2_ref, b2_ref,
                w3_ref, b3_ref,
                w4_ref, b4_ref,
                o_ref):
    # tl/tr arrive as f32 (TB, 20) tiles; cast to bf16 in-kernel so HBM traffic
    # is the raw f32 inputs only (no wrapper-side cast / rematerialization).
    tl = tl_ref[...].astype(jnp.bfloat16)
    tr = tr_ref[...].astype(jnp.bfloat16)

    # Layer 1 as split-K: tl@W1[:20] + tr@W1[20:] == concat(tl,tr)@W1,
    # avoiding any in-kernel lane concatenation.  bf16 x bf16 -> f32 on MXU.
    h = (jnp.dot(tl, w1a_ref[...], preferred_element_type=jnp.float32)
         + jnp.dot(tr, w1b_ref[...], preferred_element_type=jnp.float32)
         + b1_ref[...])
    h = jnp.maximum(h, 0.0).astype(jnp.bfloat16)

    h = jnp.dot(h, w2_ref[...], preferred_element_type=jnp.float32) + b2_ref[...]
    h = jnp.maximum(h, 0.0).astype(jnp.bfloat16)

    h = jnp.dot(h, w3_ref[...], preferred_element_type=jnp.float32) + b3_ref[...]
    h = jnp.maximum(h, 0.0).astype(jnp.bfloat16)

    y = jnp.dot(h, w4_ref[...], preferred_element_type=jnp.float32) + b4_ref[...]
    o_ref[...] = y.astype(o_ref.dtype)


def prepare_params(params):
    """One-time parameter prep: split W1, cast weights to bf16, reshape biases.

    Hoisted out of the forward so the per-call path launches only the kernel
    (no per-call slice/cast/reshape XLA ops on the small-batch inference path).
    """
    w1, b1, w2, b2, w3, b3, w4, b4 = params
    return (
        w1[:FLAT].astype(jnp.bfloat16),      # w1a: (20, 128)
        w1[FLAT:].astype(jnp.bfloat16),      # w1b: (20, 128)
        b1.reshape(1, -1).astype(jnp.float32),
        w2.astype(jnp.bfloat16),
        b2.reshape(1, -1).astype(jnp.float32),
        w3.astype(jnp.bfloat16),
        b3.reshape(1, -1).astype(jnp.float32),
        w4.astype(jnp.bfloat16),
        b4.reshape(1, -1).astype(jnp.float32),
    )


def mlp_planner_forward(track_left, track_right, prepared):
    """track_left, track_right: (B, n_track, 2) f32 -> (B, n_waypoints, 2) f32.

    `prepared` is the output of prepare_params().
    """
    b = track_left.shape[0]

    # Flatten each side (free metadata reshape); keep f32 — cast happens in-kernel.
    tl = track_left.reshape(b, FLAT)
    tr = track_right.reshape(b, FLAT)

    (w1a, w1b, b1r, w2b, b2r, w3b, b3r, w4b, b4r) = prepared

    # Batch tile: small batches get a right-sized tile (no 256-row floor);
    # large batches use 256-aligned tiles capped at 2048.
    if b <= _SMALL_BATCH:
        tb = _round_up(max(b, 1), 16)
    else:
        tb = min(_MAX_TB, _round_up(b, _MXU_TILE))
    grid = (pl.cdiv(b, tb),)

    # Weights/biases: full-array block, constant index_map -> VMEM resident,
    # never re-DMA'd across grid steps.
    def resident(a):
        nd = a.ndim
        return pl.BlockSpec(a.shape, lambda i, _nd=nd: (0,) * _nd)

    flops = 2 * b * (IN_DIM * HIDDEN + 2 * HIDDEN * HIDDEN + HIDDEN * OUT_DIM)
    weight_bytes = sum(int(w.size) * w.dtype.itemsize
                       for w in (w1a, w1b, w2b, w3b, w4b, b1r, b2r, b3r, b4r))
    bytes_accessed = (int(tl.size) + int(tr.size)) * 4 + b * OUT_DIM * 4 + weight_bytes

    out = pl.pallas_call(
        _mlp_kernel,
        out_shape=jax.ShapeDtypeStruct((b, OUT_DIM), jnp.float32),
        grid=grid,
        in_specs=[
            pl.BlockSpec((tb, FLAT), lambda i: (i, 0)),   # track_left tile (f32)
            pl.BlockSpec((tb, FLAT), lambda i: (i, 0)),   # track_right tile (f32)
            resident(w1a), resident(w1b), resident(b1r),
            resident(w2b), resident(b2r),
            resident(w3b), resident(b3r),
            resident(w4b), resident(b4r),
        ],
        out_specs=pl.BlockSpec((tb, OUT_DIM), lambda i: (i, 0)),
        compiler_params=pltpu.CompilerParams(
            # Batch axis shards across TensorCores on v7x; no-op on v5e/v6e.
            # If a v7x profile shows one TC idle, use (pltpu.CORE_PARALLEL,).
            dimension_semantics=("parallel",),
            vmem_limit_bytes=48 * 1024 * 1024,
        ),
        cost_estimate=pl.CostEstimate(
            flops=flops, transcendentals=0, bytes_accessed=bytes_accessed),
    )(tl, tr, w1a, w1b, b1r, w2b, b2r, w3b, b3r, w4b, b4r)

    return out.reshape(b, N_WAYPOINTS, 2)


def init_params(key):
    """Deterministic PyTorch-style (uniform +-1/sqrt(fan_in)) init, f32 masters."""
    dims = [(IN_DIM, HIDDEN), (HIDDEN, HIDDEN), (HIDDEN, HIDDEN), (HIDDEN, OUT_DIM)]
    params = []
    for (fan_in, fan_out) in dims:
        key, kw, kb = jax.random.split(key, 3)
        bound = 1.0 / jnp.sqrt(fan_in)
        w = jax.random.uniform(kw, (fan_in, fan_out), jnp.float32, -bound, bound)
        bb = jax.random.uniform(kb, (fan_out,), jnp.float32, -bound, bound)
        params += [w, bb]
    return tuple(params)


def _reference_forward_f32(track_left, track_right, params):
    """Pure-f32 reference matching the PyTorch module semantics."""
    b = track_left.shape[0]
    x = jnp.concatenate(
        [track_left.reshape(b, -1), track_right.reshape(b, -1)], axis=1)
    w1, b1, w2, b2, w3, b3, w4, b4 = params
    h = jnp.maximum(x @ w1 + b1, 0.0)
    h = jnp.maximum(h @ w2 + b2, 0.0)
    h = jnp.maximum(h @ w3 + b3, 0.0)
    y = h @ w4 + b4
    return y.reshape(b, N_WAYPOINTS, 2)


def _reference_forward_mixed(track_left, track_right, params):
    """Mirrors the kernel's bf16-input / f32-accumulate math."""
    b = track_left.shape[0]
    x = jnp.concatenate(
        [track_left.reshape(b, -1), track_right.reshape(b, -1)],
        axis=1).astype(jnp.bfloat16)
    w1, b1, w2, b2, w3, b3, w4, b4 = params

    def lin(a, w, bb):
        return jnp.dot(a, w.astype(jnp.bfloat16),
                       preferred_element_type=jnp.float32) + bb

    h = jnp.maximum(lin(x, w1, b1), 0.0).astype(jnp.bfloat16)
    h = jnp.maximum(lin(h, w2, b2), 0.0).astype(jnp.bfloat16)
    h = jnp.maximum(lin(h, w3, b3), 0.0).astype(jnp.bfloat16)
    y = lin(h, w4, b4)
    return y.reshape(b, N_WAYPOINTS, 2)


if __name__ == "__main__":
    key = jax.random.PRNGKey(0)
    kp, kl, kr = jax.random.split(key, 3)

    params = init_params(kp)
    prepared = prepare_params(params)   # one-time weight prep (hoisted)

    # Small shape consistent with the module: batch=2, n_track=10.
    B = 2
    track_left = jax.random.normal(kl, (B, N_TRACK, 2), jnp.float32)
    track_right = jax.random.normal(kr, (B, N_TRACK, 2), jnp.float32)

    out = mlp_planner_forward(track_left, track_right, prepared)
    out = jax.block_until_ready(out)
    assert out.shape == (B, N_WAYPOINTS, 2), out.shape

    ref_mixed = _reference_forward_mixed(track_left, track_right, params)
    ref_f32 = _reference_forward_f32(track_left, track_right, params)
    assert jnp.allclose(out, ref_mixed, atol=2e-3, rtol=2e-3), \
        "mismatch vs mixed-precision reference"
    assert jnp.allclose(out, ref_f32, atol=5e-2, rtol=5e-2), \
        "mismatch vs f32 reference"

    # Extra sanity check: larger batch exercising the 256-aligned tile path
    # with a ragged (overhang) last row range.
    B2 = 1300
    k2l, k2r = jax.random.split(jax.random.PRNGKey(1))
    tl2 = jax.random.normal(k2l, (B2, N_TRACK, 2), jnp.float32)
    tr2 = jax.random.normal(k2r, (B2, N_TRACK, 2), jnp.float32)
    out2 = jax.block_until_ready(mlp_planner_forward(tl2, tr2, prepared))
    ref2 = _reference_forward_mixed(tl2, tr2, params)
    assert out2.shape == (B2, N_WAYPOINTS, 2)
    assert jnp.allclose(out2, ref2, atol=2e-3, rtol=2e-3), "mismatch on ragged batch"

    print("KERNEL_OK")
</pallas_src>

<mosaic_0001>
module attributes {stable_mosaic.version = 11 : i64} {
  func.func @_mlp_kernel(%arg0: i32, %arg1: memref<16x20xf32, #tpu.memory_space<vmem>>, %arg2: memref<16x20xf32, #tpu.memory_space<vmem>>, %arg3: memref<20x128xbf16, #tpu.memory_space<vmem>>, %arg4: memref<20x128xbf16, #tpu.memory_space<vmem>>, %arg5: memref<1x128xf32, #tpu.memory_space<vmem>>, %arg6: memref<128x128xbf16, #tpu.memory_space<vmem>>, %arg7: memref<1x128xf32, #tpu.memory_space<vmem>>, %arg8: memref<128x128xbf16, #tpu.memory_space<vmem>>, %arg9: memref<1x128xf32, #tpu.memory_space<vmem>>, %arg10: memref<128x6xbf16, #tpu.memory_space<vmem>>, %arg11: memref<1x6xf32, #tpu.memory_space<vmem>>, %arg12: memref<16x6xf32, #tpu.memory_space<vmem>>) attributes {dimension_semantics = [#tpu.dimension_semantics<parallel>], iteration_bounds = array<i64: 1>, scalar_prefetch = 0 : i64, scratch_operands = 0 : i64, tpu.core_type = #tpu.core_type<tc>, window_params = [{transform_indices = @transform_0, window_bounds = array<i64: 16, 20>}, {transform_indices = @transform_1, window_bounds = array<i64: 16, 20>}, {pipeline_mode = #tpu.pipeline_mode<synchronous>, transform_indices = @transform_2, window_bounds = array<i64: 20, 128>}, {pipeline_mode = #tpu.pipeline_mode<synchronous>, transform_indices = @transform_3, window_bounds = array<i64: 20, 128>}, {pipeline_mode = #tpu.pipeline_mode<synchronous>, transform_indices = @transform_4, window_bounds = array<i64: 1, 128>}, {pipeline_mode = #tpu.pipeline_mode<synchronous>, transform_indices = @transform_5, window_bounds = array<i64: 128, 128>}, {pipeline_mode = #tpu.pipeline_mode<synchronous>, transform_indices = @transform_6, window_bounds = array<i64: 1, 128>}, {pipeline_mode = #tpu.pipeline_mode<synchronous>, transform_indices = @transform_7, window_bounds = array<i64: 128, 128>}, {pipeline_mode = #tpu.pipeline_mode<synchronous>, transform_indices = @transform_8, window_bounds = array<i64: 1, 128>}, {pipeline_mode = #tpu.pipeline_mode<synchronous>, transform_indices = @transform_9, window_bounds = array<i64: 128, 6>}, {pipeline_mode = #tpu.pipeline_mode<synchronous>, transform_indices = @transform_10, window_bounds = array<i64: 1, 6>}, {transform_indices = @transform_11, window_bounds = array<i64: 16, 6>}]} {
    %c0 = arith.constant 0 : index
    %c0_0 = arith.constant 0 : index
    %0 = vector.load %arg1[%c0, %c0_0] : memref<16x20xf32, #tpu.memory_space<vmem>>, vector<16x20xf32>
    %1 = arith.truncf %0 : vector<16x20xf32> to vector<16x20xbf16>
    %c0_1 = arith.constant 0 : index
    %c0_2 = arith.constant 0 : index
    %2 = vector.load %arg2[%c0_1, %c0_2] : memref<16x20xf32, #tpu.memory_space<vmem>>, vector<16x20xf32>
    %3 = arith.truncf %2 : vector<16x20xf32> to vector<16x20xbf16>
    %c0_3 = arith.constant 0 : index
    %c0_4 = arith.constant 0 : index
    %4 = vector.load %arg3[%c0_3, %c0_4] : memref<20x128xbf16, #tpu.memory_space<vmem>>, vector<20x128xbf16>
    %cst = arith.constant dense<0.000000e+00> : vector<16x128xf32>
    %5 = tpu.matmul %1, %4, %cst {dimension_numbers = #tpu.dot_dimension_numbers<[1], [0], [0], [1], [0, 0, 1, 1], [], []>} : vector<16x20xbf16>, vector<20x128xbf16>, vector<16x128xf32> -> vector<16x128xf32>
    %c0_5 = arith.constant 0 : index
    %c0_6 = arith.constant 0 : index
    %6 = vector.load %arg4[%c0_5, %c0_6] : memref<20x128xbf16, #tpu.memory_space<vmem>>, vector<20x128xbf16>
    %cst_7 = arith.constant dense<0.000000e+00> : vector<16x128xf32>
    %7 = tpu.matmul %3, %6, %cst_7 {dimension_numbers = #tpu.dot_dimension_numbers<[1], [0], [0], [1], [0, 0, 1, 1], [], []>} : vector<16x20xbf16>, vector<20x128xbf16>, vector<16x128xf32> -> vector<16x128xf32>
    %8 = arith.addf %5, %7 : vector<16x128xf32>
    %c0_8 = arith.constant 0 : index
    %c0_9 = arith.constant 0 : index
    %9 = vector.load %arg5[%c0_8, %c0_9] : memref<1x128xf32, #tpu.memory_space<vmem>>, vector<1x128xf32>
    %10 = vector.broadcast %9 : vector<1x128xf32> to vector<16x128xf32>
    %11 = arith.addf %8, %10 : vector<16x128xf32>
    %cst_10 = arith.constant 0.000000e+00 : f32
    %12 = vector.broadcast %cst_10 : f32 to vector<16x128xf32>
    %13 = arith.maximumf %11, %12 : vector<16x128xf32>
    %14 = arith.truncf %13 : vector<16x128xf32> to vector<16x128xbf16>
    %c0_11 = arith.constant 0 : index
    %c0_12 = arith.constant 0 : index
    %15 = vector.load %arg6[%c0_11, %c0_12] : memref<128x128xbf16, #tpu.memory_space<vmem>>, vector<128x128xbf16>
    %cst_13 = arith.constant dense<0.000000e+00> : vector<16x128xf32>
    %16 = tpu.matmul %14, %15, %cst_13 {dimension_numbers = #tpu.dot_dimension_numbers<[1], [0], [0], [1], [0, 0, 1, 1], [], []>} : vector<16x128xbf16>, vector<128x128xbf16>, vector<16x128xf32> -> vector<16x128xf32>
    %c0_14 = arith.constant 0 : index
    %c0_15 = arith.constant 0 : index
    %17 = vector.load %arg7[%c0_14, %c0_15] : memref<1x128xf32, #tpu.memory_space<vmem>>, vector<1x128xf32>
    %18 = vector.broadcast %17 : vector<1x128xf32> to vector<16x128xf32>
    %19 = arith.addf %16, %18 : vector<16x128xf32>
    %cst_16 = arith.constant 0.000000e+00 : f32
    %20 = vector.broadcast %cst_16 : f32 to vector<16x128xf32>
    %21 = arith.maximumf %19, %20 : vector<16x128xf32>
    %22 = arith.truncf %21 : vector<16x128xf32> to vector<16x128xbf16>
    %c0_17 = arith.constant 0 : index
    %c0_18 = arith.constant 0 : index
    %23 = vector.load %arg8[%c0_17, %c0_18] : memref<128x128xbf16, #tpu.memory_space<vmem>>, vector<128x128xbf16>
    %cst_19 = arith.constant dense<0.000000e+00> : vector<16x128xf32>
    %24 = tpu.matmul %22, %23, %cst_19 {dimension_numbers = #tpu.dot_dimension_numbers<[1], [0], [0], [1], [0, 0, 1, 1], [], []>} : vector<16x128xbf16>, vector<128x128xbf16>, vector<16x128xf32> -> vector<16x128xf32>
    %c0_20 = arith.constant 0 : index
    %c0_21 = arith.constant 0 : index
    %25 = vector.load %arg9[%c0_20, %c0_21] : memref<1x128xf32, #tpu.memory_space<vmem>>, vector<1x128xf32>
    %26 = vector.broadcast %25 : vector<1x128xf32> to vector<16x128xf32>
    %27 = arith.addf %24, %26 : vector<16x128xf32>
    %cst_22 = arith.constant 0.000000e+00 : f32
    %28 = vector.broadcast %cst_22 : f32 to vector<16x128xf32>
    %29 = arith.maximumf %27, %28 : vector<16x128xf32>
    %30 = arith.truncf %29 : vector<16x128xf32> to vector<16x128xbf16>
    %c0_23 = arith.constant 0 : index
    %c0_24 = arith.constant 0 : index
    %31 = vector.load %arg10[%c0_23, %c0_24] : memref<128x6xbf16, #tpu.memory_space<vmem>>, vector<128x6xbf16>
    %cst_25 = arith.constant dense<0.000000e+00> : vector<16x6xf32>
    %32 = tpu.matmul %30, %31, %cst_25 {dimension_numbers = #tpu.dot_dimension_numbers<[1], [0], [0], [1], [0, 0, 1, 1], [], []>} : vector<16x128xbf16>, vector<128x6xbf16>, vector<16x6xf32> -> vector<16x6xf32>
    %c0_26 = arith.constant 0 : index
    %c0_27 = arith.constant 0 : index
    %33 = vector.load %arg11[%c0_26, %c0_27] : memref<1x6xf32, #tpu.memory_space<vmem>>, vector<1x6xf32>
    %34 = vector.broadcast %33 : vector<1x6xf32> to vector<16x6xf32>
    %35 = arith.addf %32, %34 : vector<16x6xf32>
    %c0_28 = arith.constant 0 : index
    %c0_29 = arith.constant 0 : index
    %36 = vector.load %arg12[%c0_28, %c0_29] : memref<16x6xf32, #tpu.memory_space<vmem>>, vector<16x6xf32>
    tpu.vector_store %arg12[%c0_28, %c0_29], %35 {strides = array<i32>} : memref<16x6xf32, #tpu.memory_space<vmem>>, vector<16x6xf32>,
    return
  }
  func.func @transform_0(%arg0: i32) -> (i32, i32) {
    %c0_i32 = arith.constant 0 : i32
    %c0_i32_0 = arith.constant 0 : i32
    return %arg0, %c0_i32 : i32, i32
  }
  func.func @transform_1(%arg0: i32) -> (i32, i32) {
    %c0_i32 = arith.constant 0 : i32
    %c0_i32_0 = arith.constant 0 : i32
    return %arg0, %c0_i32 : i32, i32
  }
  func.func @transform_2(%arg0: i32) -> (i32, i32) {
    %c0_i32 = arith.constant 0 : i32
    %c0_i32_0 = arith.constant 0 : i32
    %c0_i32_1 = arith.constant 0 : i32
    return %c0_i32, %c0_i32_0 : i32, i32
  }
  func.func @transform_3(%arg0: i32) -> (i32, i32) {
    %c0_i32 = arith.constant 0 : i32
    %c0_i32_0 = arith.constant 0 : i32
    %c0_i32_1 = arith.constant 0 : i32
    return %c0_i32, %c0_i32_0 : i32, i32
  }
  func.func @transform_4(%arg0: i32) -> (i32, i32) {
    %c0_i32 = arith.constant 0 : i32
    %c0_i32_0 = arith.constant 0 : i32
    %c0_i32_1 = arith.constant 0 : i32
    return %c0_i32, %c0_i32_0 : i32, i32
  }
  func.func @transform_5(%arg0: i32) -> (i32, i32) {
    %c0_i32 = arith.constant 0 : i32
    %c0_i32_0 = arith.constant 0 : i32
    %c0_i32_1 = arith.constant 0 : i32
    return %c0_i32, %c0_i32_0 : i32, i32
  }
  func.func @transform_6(%arg0: i32) -> (i32, i32) {
    %c0_i32 = arith.constant 0 : i32
    %c0_i32_0 = arith.constant 0 : i32
    %c0_i32_1 = arith.constant 0 : i32
    return %c0_i32, %c0_i32_0 : i32, i32
  }
  func.func @transform_7(%arg0: i32) -> (i32, i32) {
    %c0_i32 = arith.constant 0 : i32
    %c0_i32_0 = arith.constant 0 : i32
    %c0_i32_1 = arith.constant 0 : i32
    return %c0_i32, %c0_i32_0 : i32, i32
  }
  func.func @transform_8(%arg0: i32) -> (i32, i32) {
    %c0_i32 = arith.constant 0 : i32
    %c0_i32_0 = arith.constant 0 : i32
    %c0_i32_1 = arith.constant 0 : i32
    return %c0_i32, %c0_i32_0 : i32, i32
  }
  func.func @transform_9(%arg0: i32) -> (i32, i32) {
    %c0_i32 = arith.constant 0 : i32
    %c0_i32_0 = arith.constant 0 : i32
    %c0_i32_1 = arith.constant 0 : i32
    return %c0_i32, %c0_i32_0 : i32, i32
  }
  func.func @transform_10(%arg0: i32) -> (i32, i32) {
    %c0_i32 = arith.constant 0 : i32
    %c0_i32_0 = arith.constant 0 : i32
    %c0_i32_1 = arith.constant 0 : i32
    return %c0_i32, %c0_i32_0 : i32, i32
  }
  func.func @transform_11(%arg0: i32) -> (i32, i32) {
    %c0_i32 = arith.constant 0 : i32
    %c0_i32_0 = arith.constant 0 : i32
    return %arg0, %c0_i32 : i32, i32
  }
}

</mosaic_0001>

<bundles_post_ra>
// kernel: tpu_custom_call.1
= control target key start
LH: loop header
LB: loop body
LE: loop exit
PB: predicated region body
PF: predicated region fallthrough
CT: control target
= control target key end

     0   :  { %16 = vsyncpa [#allocation3], 0  ;;  %s1044_s0 = inlined_call_operand.vmem [shape: f32[2,20], index: 0, kind: input, shape index: {}]   ;;  %s1045_s1 = inlined_call_operand.vmem [shape: f32[2,20], index: 1, kind: input, shape index: {}]   ;;  %s1046_s2 = inlined_call_operand.vmem [shape: bf16[20,128], index: 2, kind: input, shape index: {}]   ;;  %s1047_s3 = inlined_call_operand.hbm [shape: bf16[20,128], index: 3, kind: input, shape index: {}]   ;;  %s1048_s4 = inlined_call_operand.vmem [shape: f32[1,128], index: 4, kind: input, shape index: {}]   ;;  %s1049_s5 = inlined_call_operand.vmem [shape: bf16[128,128], index: 5, kind: input, shape index: {}]   ;;  %s1050_s6 = inlined_call_operand.vmem [shape: f32[1,128], index: 6, kind: input, shape index: {}]   ;;  %s1051_s7 = inlined_call_operand.hbm [shape: bf16[128,128], index: 7, kind: input, shape index: {}]   ;;  %s1052_s8 = inlined_call_operand.vmem [shape: f32[1,128], index: 8, kind: input, shape index: {}]   ;;  %s1053_s9 = inlined_call_operand.vmem [shape: bf16[128,6], index: 9, kind: input, shape index: {}]   ;;  %s1054_s10 = inlined_call_operand.vmem [shape: f32[1,6], index: 10, kind: input, shape index: {}]   ;;  %s1055_s11 = inlined_call_operand.hbm [shape: f32[2,6], index: 11, kind: output, shape index: {}]  }
   0x1   :  { %17 = vsyncpa [#allocation6], 0 }
   0x2   :  { %18 = vsyncpa [#allocation4], 0  ;;  %s821_s17 = smov [#allocation2]   ;;  %s749_s21 = scalar_lea.hbm %s1047_s3, 192 }
   0x3   :  { %s30_s18 = sshll.u32 %s821_s17, 4  ;;  %p750_p0 = scmp.ne.s32.totalorder %s1047_s3, %s749_s21  ;;  %s31_s18 = int_to_ptr.vmem [resolvable:$true] %s30_s18 }
   0x4   :  { %p753_p1 = scmp.lt.u32.totalorder %s749_s21, %s1047_s3 }
   0x6   :  { %p755_p2 = pnand %p753_p1, %p750_p0 }
   0x8   :  { %758 = shalt.err (!%p755_p2)
}
   0x9   :  { %s759_s26 = scalar_lea.vmem %s31_s18, 192  ;;  %p764_p4 = scmp.lt.s32.totalorder %s31_s18, %s31_s18 }
   0xa   :  { %p760_p3 = scmp.ne.s32.totalorder %s31_s18, %s759_s26  ;;  %p765_p5 = scmp.lt.s32.totalorder %s759_s26, %s759_s26 }
   0xc   :  { %p766_p6 = por %p765_p5, %p764_p4 }
   0xe   :  { %p767_p7 = pnand %p766_p6, %p760_p3 }
  0x10   :  { %770 = shalt.err (!%p767_p7)
}
  0x11   :  { %s822_s27 = smov 64   ;;  %s823_s28 = smov 4  }
  0x12   :  { %36 = dma.hbm_to_vmem [thread:$0]  %s1047_s3, 192, %s31_s18, [#allocation3], %s822_s27, %s822_s27, %s823_s28  }
  0x13   :  { %s824_s12 = smov [#allocation5]   ;;  %s771_s16 = scalar_lea.hbm %s1051_s7, 1024 }
  0x14   :  { %s48_s13 = sshll.u32 %s824_s12, 4  ;;  %p772_p8 = scmp.ne.s32.totalorder %s1051_s7, %s771_s16  ;;  %s49_s13 = int_to_ptr.vmem [resolvable:$true] %s48_s13 }
  0x15   :  { %p775_p9 = scmp.lt.u32.totalorder %s771_s16, %s1051_s7 }
  0x17   :  { %p777_p10 = pnand %p775_p9, %p772_p8 }
  0x19   :  { %780 = shalt.err (!%p777_p10)
}
  0x1a   :  { %s781_s22 = scalar_lea.vmem %s49_s13, 1024  ;;  %p786_p12 = scmp.lt.s32.totalorder %s49_s13, %s49_s13 }
  0x1b   :  { %p782_p11 = scmp.ne.s32.totalorder %s49_s13, %s781_s22  ;;  %p787_p13 = scmp.lt.s32.totalorder %s781_s22, %s781_s22 }
  0x1d   :  { %p788_p0 = por %p787_p13, %p786_p12 }
  0x1f   :  { %p789_p1 = pnand %p788_p0, %p782_p11 }
  0x21   :  { %792 = shalt.err (!%p789_p1)
}
  0x22   :  { %54 = dma.hbm_to_vmem [thread:$0]  %s1051_s7, 1024, %s49_s13, [#allocation6], %s822_s27, %s822_s27, %s823_s28  }
  0x23   :  { %815 = dma.done.wait [#allocation3], 192  }
  0x24   :  { %816 = vsyncadd [#allocation3], 4294967104 }
  0x25   :  { %817 = dma.done.wait [#allocation6], 1024  }
  0x26   :  { %818 = vsyncadd [#allocation6], 4294966272  ;;  %v825_v0 = vmov 0.0   ;;  %vm826_vm0 = vmmov 0   ;;  %v721_v1 = vld [vmem:[#allocation2] sm:$0xff]   ;;  %vm93_vm1 = vcmask 1041408  }
  0x27   :  { %636 = vmatprep.subr.bf16.mxu1 %v825_v0  ;;  %640 = vmatprep.mubr.msk.bf16.mxu1 %vm826_vm0, %v825_v0  ;;  %v722_v2 = vld [vmem:[#allocation2 + $0x8] ss:$0 sps:$4 sm:$0x33]   ;;  %v71_v3 = vld [vmem:[%s1045_s1] sm:$0xff]  ;;  %vm89_vm2 = vcmask 162816   ;;  %v727_v14 = vld [vmem:[%s1049_s5 + $0x10] sm:$0xff]  }
  0x28   :  { %652 = vmatprep.subr.bf16.mxu0 %v825_v0  ;;  %668 = vmatprep.mubr.msk.bf16.mxu0 %vm826_vm0, %v825_v0  ;;  %v72_v4 = vld [vmem:[%s1045_s1 + $0x8] sm:$0xff]  ;;  %v95_v5 = vsel %vm93_vm1, %v722_v2, 0  ;;  %v725_v8 = vld [vmem:[%s1049_s5] sm:$0xff]   ;;  %v728_v16 = vld [vmem:[%s1049_s5 + $0x18] sm:$0xff]   ;;  %vm548_vm3 = vcmask 48128  }
  0x29   :  { %637 = vmatpush3.bf16.msra.mxu1 %v721_v1  ;;  %v724_v6 = vld [vmem:[%s1046_s2 + $0x8] ss:$0 sps:$4 sm:$0x33]   ;;  %v73_v7 = vpack.c.bf16 %v72_v4, %v71_v3  ;;  %v723_v9 = vld [vmem:[%s1046_s2] sm:$0xff]   ;;  %653 = vmatpush3.bf16.msra.mxu0 %v725_v8  ;;  %v731_v19 = vld [vmem:[%s1049_s5 + $0x30] sm:$0xff]  }
  0x2a   :  { %638 = vmatprep.subr.bf16.mxu1 %v825_v0  ;;  %v151_v10 = vsel %vm93_vm1, %v724_v6, 0  ;;  %v726_v11 = vld [vmem:[%s1049_s5 + $0x8] sm:$0xff]   ;;  %v68_v12 = vld [vmem:[%s1044_s0] sm:$0xff]  ;;  %654 = vmatprep.subr.bf16.mxu0 %v825_v0  ;;  %v732_v20 = vld [vmem:[%s1049_s5 + $0x38] sm:$0xff]  }
  0x2b   :  { %v69_v13 = vld [vmem:[%s1044_s0 + $0x8] sm:$0xff]  ;;  %v729_v17 = vld [vmem:[%s1049_s5 + $0x20] sm:$0xff]   ;;  %v734_v22 = vld [vmem:[#allocation5 + $0x8] sm:$0xff]  }
  0x2c   :  { %v70_v15 = vpack.c.bf16 %v69_v13, %v68_v12  ;;  %v730_v18 = vld [vmem:[%s1049_s5 + $0x28] sm:$0xff]   ;;  %v735_v23 = vld [vmem:[#allocation5 + $0x10] sm:$0xff]   ;;  %v738_v26 = vld [vmem:[#allocation5 + $0x28] sm:$0xff]  }
  0x2d   :  { %639 = vmatpush3.bf16.msra.mxu1 %v95_v5  ;;  %655 = vmatpush3.bf16.msra.mxu0 %v726_v11  ;;  %v733_v21 = vld [vmem:[#allocation5] sm:$0xff]   ;;  %v736_v24 = vld [vmem:[#allocation5 + $0x18] sm:$0xff]   ;;  %v575_v32 = vld [vmem:[%s1048_s4] ss:$0 sm:$0xff] }
  0x2e   :  { %644 = vmatprep.subr.bf16.mxu1 %v825_v0  ;;  %656 = vmatprep.subr.bf16.mxu0 %v825_v0  ;;  %v737_v25 = vld [vmem:[#allocation5 + $0x20] sm:$0xff]   ;;  %v739_v43 = vld [vmem:[#allocation5 + $0x30] sm:$0xff]   ;;  %v740_v44 = vld [vmem:[#allocation5 + $0x38] sm:$0xff]  }
  0x2f   :  { %v741_v45 = vld [vmem:[%s1053_s9] sm:$0xff]   ;;  %v742_v46 = vld [vmem:[%s1053_s9 + $0x8] sm:$0xff]   ;;  %v743_v47 = vld [vmem:[%s1053_s9 + $0x10] sm:$0xff]  }
  0x30   :  { %641 = vmatmul.mubr.msk.bf16.vlgmr.msra.gmra.mrb[0].mxu1 %vm89_vm2, %v73_v7  ;;  %v744_v48 = vld [vmem:[%s1053_s9 + $0x18] sm:$0xff]   ;;  %v745_v49 = vld [vmem:[%s1053_s9 + $0x20] sm:$0xff]   ;;  %v746_v50 = vld [vmem:[%s1053_s9 + $0x28] sm:$0xff]  }
  0x31   :  { %645 = vmatpush3.bf16.msra.mxu1 %v723_v9  ;;  %648 = vmatprep.mubr.msk.bf16.mxu1 %vm826_vm0, %v825_v0  ;;  %v576_v51 = vld [vmem:[%s1050_s6] ss:$0 sm:$0xff]  ;;  %v747_v61 = vld [vmem:[%s1053_s9 + $0x30] sm:$0xff]   ;;  %v748_v62 = vld [vmem:[%s1053_s9 + $0x38] sm:$0xff]  }
  0x32   :  { %646 = vmatprep.subr.bf16.mxu1 %v825_v0  ;;  %657 = vmatpush3.bf16.msra.mxu0 %v727_v14  ;;  %v585_v63 = vld [vmem:[%s1052_s8] ss:$0 sm:$0xff] }
  0x33   :  { %658 = vmatprep.subr.bf16.mxu0 %v825_v0 }
  0x35   :  { %647 = vmatpush3.bf16.msra.mxu1 %v151_v10 }
  0x36   :  { %672 = vmatprep.subr.bf16.mxu1 %v825_v0  ;;  %659 = vmatpush3.bf16.msra.mxu0 %v728_v16 }
  0x37   :  { %660 = vmatprep.subr.bf16.mxu0 %v825_v0 }
  0x38   :  { %649 = vmatmul.mubr.msk.bf16.vlgmr.msra.gmra.mrb[4].mxu1 %vm89_vm2, %v70_v15 }
  0x39   :  { %688 = vmatprep.mubr.msk.bf16.mxu1 %vm826_vm0, %v825_v0  ;;  %673 = vmatpush3.bf16.msra.mxu1 %v733_v21 }
  0x3a   :  { %661 = vmatpush3.bf16.msra.mxu0 %v729_v17  ;;  %674 = vmatprep.subr.bf16.mxu1 %v825_v0 }
  0x3b   :  { %662 = vmatprep.subr.bf16.mxu0 %v825_v0 }
  0x3d   :  { %675 = vmatpush3.bf16.msra.mxu1 %v734_v22 }
  0x3e   :  { %663 = vmatpush3.bf16.msra.mxu0 %v730_v18  ;;  %676 = vmatprep.subr.bf16.mxu1 %v825_v0 }
  0x3f   :  { %664 = vmatprep.subr.bf16.mxu0 %v825_v0 }
  0x41   :  { %677 = vmatpush3.bf16.msra.mxu1 %v735_v23 }
  0x42   :  { %665 = vmatpush3.bf16.msra.mxu0 %v731_v19  ;;  %678 = vmatprep.subr.bf16.mxu1 %v825_v0 }
  0x43   :  { %666 = vmatprep.subr.bf16.mxu0 %v825_v0 }
  0x45   :  { %679 = vmatpush3.bf16.msra.mxu1 %v736_v24 }
  0x46   :  { %667 = vmatpush3.bf16.msra.mxu0 %v732_v20  ;;  %680 = vmatprep.subr.bf16.mxu1 %v825_v0 }
  0x47   :  { %692 = vmatprep.subr.bf16.mxu0 %v825_v0 }
  0x49   :  { %681 = vmatpush3.bf16.msra.mxu1 %v737_v25 }
  0x4a   :  { %682 = vmatprep.subr.bf16.mxu1 %v825_v0 }
  0x4d   :  { %683 = vmatpush3.bf16.msra.mxu1 %v738_v26 }
  0x4e   :  { %684 = vmatprep.subr.bf16.mxu1 %v825_v0 }
  0x51   :  { %685 = vmatpush3.bf16.msra.mxu1 %v739_v43 }
  0x52   :  { %686 = vmatprep.subr.bf16.mxu1 %v825_v0 }
  0x55   :  { %687 = vmatpush3.bf16.msra.mxu1 %v740_v44 }
 0x103   :  { %v131_v27 = vpop.f32.mrb[0].mxu1 }
 0x104   :  { %v642_v28 = vpop.f32.mrb[1].mxu1 }
 0x105   :  { %v134_v29 = vpop.f32.mrb[2].mxu1 }
 0x106   :  { %v643_v30 = vpop.f32.mrb[3].mxu1 }
 0x10b   :  { %v187_v31 = vpop.f32.mrb[4].mxu1 }
 0x10c   :  { %v188_v33 = vadd.f32 %v187_v31, %v131_v27  ;;  %v650_v34 = vpop.f32.mrb[5].mxu1 }
 0x10d   :  { %v190_v35 = vpop.f32.mrb[6].mxu1 }
 0x10e   :  { %v201_v36 = vadd.f32 %v575_v32, %v188_v33  ;;  %v191_v37 = vadd.f32 %v190_v35, %v134_v29  ;;  %v651_v38 = vpop.f32.mrb[7].mxu1 }
 0x110   :  { %v202_v39 = vadd.f32 %v575_v32, %v191_v37  ;;  %v203_v40 = vmax.f32 %v201_v36, 0.0 }
 0x112   :  { %v204_v41 = vmax.f32 %v202_v39, 0.0 }
 0x114   :  { %v205_v42 = vpack.c.bf16 %v204_v41, %v203_v40 }
 0x116   :  { %669 = vmatmul.mubr.bf16.vlgmr.msra.gmra.mrb[0].mxu0 %v205_v42 }
 0x117   :  { %708 = vmatprep.mubr.msk.bf16.mxu0 %vm826_vm0, %v825_v0  ;;  %693 = vmatpush3.bf16.msra.mxu0 %v741_v45 }
 0x118   :  { %694 = vmatprep.subr.bf16.mxu0 %v825_v0 }
 0x11b   :  { %695 = vmatpush3.bf16.msra.mxu0 %v742_v46 }
 0x11c   :  { %696 = vmatprep.subr.bf16.mxu0 %v825_v0 }
 0x11f   :  { %697 = vmatpush3.bf16.msra.mxu0 %v743_v47 }
 0x120   :  { %698 = vmatprep.subr.bf16.mxu0 %v825_v0 }
 0x123   :  { %699 = vmatpush3.bf16.msra.mxu0 %v744_v48 }
 0x124   :  { %700 = vmatprep.subr.bf16.mxu0 %v825_v0 }
 0x127   :  { %701 = vmatpush3.bf16.msra.mxu0 %v745_v49 }
 0x128   :  { %702 = vmatprep.subr.bf16.mxu0 %v825_v0 }
 0x12b   :  { %703 = vmatpush3.bf16.msra.mxu0 %v746_v50 }
 0x12c   :  { %704 = vmatprep.subr.bf16.mxu0 %v825_v0 }
 0x12f   :  { %705 = vmatpush3.bf16.msra.mxu0 %v747_v61 }
 0x130   :  { %706 = vmatprep.subr.bf16.mxu0 %v825_v0  ;;  %v594_v0 = vld [vmem:[%s1054_s10] ss:$0 sm:$0xff] }
 0x133   :  { %707 = vmatpush3.bf16.msra.mxu0 %v748_v62 }
 0x1e9   :  { %v311_v52 = vpop.f32.mrb[0].mxu0 }
 0x1ea   :  { %v312_v53 = vadd.f32 %v576_v51, %v311_v52  ;;  %v670_v54 = vpop.f32.mrb[1].mxu0 }
 0x1eb   :  { %v314_v55 = vpop.f32.mrb[2].mxu0 }
 0x1ec   :  { %v315_v56 = vadd.f32 %v576_v51, %v314_v55  ;;  %v671_v57 = vpop.f32.mrb[3].mxu0  ;;  %v318_v58 = vmax.f32 %v312_v53, 0.0 }
 0x1ee   :  { %v319_v59 = vmax.f32 %v315_v56, 0.0 }
 0x1f0   :  { %v320_v60 = vpack.c.bf16 %v319_v59, %v318_v58 }
 0x1f2   :  { %689 = vmatmul.mubr.bf16.vlgmr.msra.gmra.mrb[8].mxu1 %v320_v60 }
 0x2c5   :  { %v426_v1 = vpop.f32.mrb[8].mxu1 }
 0x2c6   :  { %v427_v2 = vadd.f32 %v585_v63, %v426_v1  ;;  %v690_v3 = vpop.f32.mrb[9].mxu1 }
 0x2c7   :  { %v429_v4 = vpop.f32.mrb[10].mxu1 }
 0x2c8   :  { %v430_v5 = vadd.f32 %v585_v63, %v429_v4  ;;  %v691_v6 = vpop.f32.mrb[11].mxu1  ;;  %v433_v7 = vmax.f32 %v427_v2, 0.0 }
 0x2ca   :  { %v434_v8 = vmax.f32 %v430_v5, 0.0 }
 0x2cc   :  { %v435_v9 = vpack.c.bf16 %v434_v8, %v433_v7 }
 0x2ce   :  { %709 = vmatmul.mubr.bf16.vlgmr.msra.gmra.mrb[4].mxu0 %v435_v9 }
 0x3a1   :  { %v541_v10 = vpop.f32.mrb[4].mxu0 }
 0x3a2   :  { %v542_v11 = vadd.f32 %v594_v0, %v541_v10  ;;  %v710_v12 = vpop.f32.mrb[5].mxu0 }
 0x3a3   :  { %v544_v13 = vpop.f32.mrb[6].mxu0 }
 0x3a4   :  { %549 = vst.msk [vmem:[#allocation7] sm:$0xff] %vm548_vm3, %v542_v11  ;;  %v545_v14 = vadd.f32 %v594_v0, %v544_v13  ;;  %v711_v15 = vpop.f32.mrb[7].mxu0 }
 0x3a6   :  { %550 = vst.msk [vmem:[#allocation7 + $0x8] sm:$0xff] %vm548_vm3, %v545_v14 }
 0x3a7   :  { %555 = vsyncadd [#allocation4], 224  ;;  %s827_s8 = smov [#allocation7]  }
 0x3a8   :  { %s556_s9 = sshll.u32 %s827_s8, 4  ;;  %s557_s9 = int_to_ptr.vmem [resolvable:$true] %s556_s9 }
 0x3a9   :  { %s793_s23 = scalar_lea.vmem %s557_s9, 32  ;;  %s797_s24 = scalar_lea.vmem %s557_s9, 256 }
 0x3aa   :  { %p794_p2 = scmp.ne.s32.totalorder %s557_s9, %s793_s23  ;;  %p798_p3 = scmp.lt.s32.totalorder %s557_s9, %s557_s9 }
 0x3ab   :  { %p799_p4 = scmp.lt.s32.totalorder %s797_s24, %s793_s23 }
 0x3ad   :  { %p800_p5 = por %p799_p4, %p798_p3 }
 0x3af   :  { %p801_p6 = pnand %p800_p5, %p794_p2 }
 0x3b1   :  { %804 = shalt.err (!%p801_p6)
}
 0x3b2   :  { %s805_s5 = scalar_lea.hbm %s1055_s11, 32 }
 0x3b3   :  { %p806_p7 = scmp.ne.s32.totalorder %s1055_s11, %s805_s5  ;;  %p809_p8 = scmp.lt.u32.totalorder %s805_s5, %s1055_s11 }
 0x3b5   :  { %p811_p9 = pnand %p809_p8, %p806_p7 }
 0x3b7   :  { %814 = shalt.err (!%p811_p9)
}
 0x3b8   :  { %s828_s29 = smov 32   ;;  %s829_s30 = smov 2  }
 0x3b9   :  { %562 = dma.vmem_to_hbm [thread:$0]  %s557_s9, 32, %s1055_s11, [#allocation4], %s828_s29, %s828_s29, %s829_s30  }
 0x3ba   :  { %819 = dma.done.wait [#allocation4], 256  }
 0x3bb   :  { %820 = vsyncadd [#allocation4], 4294967040 }
 0x3bc   :  { %566 = vsyncpa [#allocation3], 1 }
 0x3bd   :  { %567 = vsyncpa [#allocation6], 1 }
 0x3be   :  { %568 = vsyncpa [#allocation4], 1 }

</bundles_post_ra>
